<compile_context>
chip_gen: v7x
topology: tpu7x:2x2x1
jax: 0.10.0
libtpu: 0.0.40
codegen_flags: <defaults>
</compile_context>

<pallas_src>
import functools
import math

import jax
import jax.numpy as jnp
from jax import lax
from jax.experimental import pallas as pl
from jax.experimental.pallas import tpu as pltpu

_VMEM_LIMIT = 32 * 1024 * 1024
_NEG_INF = float(jnp.finfo(jnp.float32).min)


def _pick_tile(dim, preferred, align):
    """Largest tile <= `preferred` that divides `dim` and is a multiple of
    `align`; falls back to the full dimension (always a legal block)."""
    if dim <= preferred:
        return dim
    start = (preferred // align) * align
    for cand in range(start, 0, -align):
        if cand > 0 and dim % cand == 0:
            return cand
    return dim


# ---------------------------------------------------------------------------
# Tiled linear projection:  y = x @ w + b
# ---------------------------------------------------------------------------
def _linear_kernel(x_ref, w_ref, b_ref, o_ref, acc_ref):
    @pl.when(pl.program_id(2) == 0)
    def _init():
        acc_ref[...] = jnp.zeros(acc_ref.shape, acc_ref.dtype)

    acc_ref[...] += jnp.dot(x_ref[...], w_ref[...],
                            preferred_element_type=jnp.float32)

    @pl.when(pl.program_id(2) == pl.num_programs(2) - 1)
    def _finalize():
        o_ref[...] = (acc_ref[...] + b_ref[...].astype(jnp.float32)
                      ).astype(o_ref.dtype)


def linear(x, w, b, *, tm=256, tn=256, tk=512):
    """x: [M, K], w: [K, N], b: [N] -> [M, N].

    tn default 256 targets the 256-wide MXU of v6e/v7x; _pick_tile falls back
    to 128 (or the full dim) when N is not 256-divisible (e.g. v5e-friendly).
    """
    M, K = x.shape
    Kw, N = w.shape
    assert K == Kw and b.shape == (N,)
    tm = _pick_tile(M, tm, 8)
    tn = _pick_tile(N, tn, 128)
    tk = _pick_tile(K, tk, 128)
    grid = (M // tm, N // tn, K // tk)
    return pl.pallas_call(
        _linear_kernel,
        out_shape=jax.ShapeDtypeStruct((M, N), x.dtype),
        grid=grid,
        in_specs=[
            pl.BlockSpec((tm, tk), lambda i, j, k: (i, k)),
            pl.BlockSpec((tk, tn), lambda i, j, k: (k, j)),
            pl.BlockSpec((1, tn), lambda i, j, k: (0, j)),
        ],
        out_specs=pl.BlockSpec((tm, tn), lambda i, j, k: (i, j)),
        scratch_shapes=[pltpu.VMEM((tm, tn), jnp.float32)],
        compiler_params=pltpu.CompilerParams(
            dimension_semantics=("parallel", "parallel", "arbitrary"),
            vmem_limit_bytes=_VMEM_LIMIT,
        ),
    )(x, w, b.reshape(1, N))


# ---------------------------------------------------------------------------
# Flash-style scaled dot-product attention over [B, S, H, D] layout
# ---------------------------------------------------------------------------
def _flash_attention_kernel(*refs, num_heads, has_mask, scale):
    if has_mask:
        q_ref, k_ref, v_ref, mask_ref, o_ref, m_scr, l_scr, acc_scr = refs
    else:
        q_ref, k_ref, v_ref, o_ref, m_scr, l_scr, acc_scr = refs
        mask_ref = None

    ki = pl.program_id(2)

    @pl.when(ki == 0)
    def _init():
        m_scr[...] = jnp.full(m_scr.shape, _NEG_INF, m_scr.dtype)
        l_scr[...] = jnp.zeros(l_scr.shape, l_scr.dtype)
        acc_scr[...] = jnp.zeros(acc_scr.shape, acc_scr.dtype)

    masked_out = None
    if mask_ref is not None:
        masked_out = mask_ref[...] == 0          # [tq, tkv]; shared by all heads

    # Static (unrolled) loop over heads; each head is a 2D MXU matmul.
    for h in range(num_heads):
        q = q_ref[:, h, :].astype(jnp.float32) * scale     # [tq, D]
        k = k_ref[:, h, :].astype(jnp.float32)             # [tkv, D]
        # scores[i, j] = sum_d q[i, d] * k[j, d]  (no explicit k.T)
        s = lax.dot_general(q, k, (((1,), (1,)), ((), ())),
                            preferred_element_type=jnp.float32)  # [tq, tkv]
        if masked_out is not None:
            s = jnp.where(masked_out, _NEG_INF, s)

        m_prev = m_scr[h]                                   # [tq, 1]
        m_new = jnp.maximum(m_prev, jnp.max(s, axis=-1, keepdims=True))
        alpha = jnp.exp(m_prev - m_new)
        p = jnp.exp(s - m_new)                              # [tq, tkv]
        l_scr[h] = alpha * l_scr[h] + jnp.sum(p, axis=-1, keepdims=True)
        pv = jnp.dot(p.astype(v_ref.dtype), v_ref[:, h, :],
                     preferred_element_type=jnp.float32)    # [tq, D]
        acc_scr[h] = alpha * acc_scr[h] + pv
        m_scr[h] = m_new

    @pl.when(ki == pl.num_programs(2) - 1)
    def _finalize():
        # Normalization deferred to here (once per q-tile); exact divide for
        # numerical fidelity with the PyTorch reference.
        # TODO(synk): training-mode dropout on attention probs not implemented.
        for h in range(num_heads):
            o_ref[:, h, :] = (acc_scr[h] / l_scr[h]).astype(o_ref.dtype)


def flash_attention(q, k, v, mask, *, q_idx=0, k_idx=0, v_idx=0,
                    tq=128, tkv=128):
    """q, k, v: [B, S, G, H, D]  (may all alias one fused-QKV array; *_idx
    selects the slot along G).  mask: [B, S, S] (0 = masked out) or None.
    Returns [B, S, H, D]."""
    B, S, G, H, D = q.shape
    scale = 1.0 / math.sqrt(D)

    tq = _pick_tile(S, tq, 8)       # sublane-aligned for the mask tile
    tkv = _pick_tile(S, tkv, 128)   # lane-aligned for the mask tile
    grid = (B, S // tq, S // tkv)

    in_specs = [
        pl.BlockSpec((None, tq, None, H, D),
                     lambda b, qi, ki, g=q_idx: (b, qi, g, 0, 0)),
        pl.BlockSpec((None, tkv, None, H, D),
                     lambda b, qi, ki, g=k_idx: (b, ki, g, 0, 0)),
        pl.BlockSpec((None, tkv, None, H, D),
                     lambda b, qi, ki, g=v_idx: (b, ki, g, 0, 0)),
    ]
    args = [q, k, v]
    has_mask = mask is not None
    if has_mask:
        in_specs.append(
            pl.BlockSpec((None, tq, tkv), lambda b, qi, ki: (b, qi, ki)))
        args.append(mask)

    kernel = functools.partial(_flash_attention_kernel,
                               num_heads=H, has_mask=has_mask, scale=scale)

    return pl.pallas_call(
        kernel,
        out_shape=jax.ShapeDtypeStruct((B, S, H, D), q.dtype),
        grid=grid,
        in_specs=in_specs,
        out_specs=pl.BlockSpec((None, tq, H, D),
                               lambda b, qi, ki: (b, qi, 0, 0)),
        scratch_shapes=[
            pltpu.VMEM((H, tq, 1), jnp.float32),   # running max
            pltpu.VMEM((H, tq, 1), jnp.float32),   # running sum
            pltpu.VMEM((H, tq, D), jnp.float32),   # output accumulator
        ],
        compiler_params=pltpu.CompilerParams(
            dimension_semantics=("parallel", "parallel", "arbitrary"),
            vmem_limit_bytes=_VMEM_LIMIT,
        ),
    )(*args)


# ---------------------------------------------------------------------------
# MultiHeadAttention forward
# ---------------------------------------------------------------------------
def multi_head_attention(queries, keys, values, params, attention_mask,
                         num_heads):
    """queries/keys/values: [B, S, E]; attention_mask: [B, S, S] or None."""
    B, S, E = queries.shape
    H = num_heads
    D = E // H

    if keys is queries and values is queries:
        # Self-attention: fuse Q/K/V into one matmul (activations read once).
        wqkv = jnp.concatenate(
            [params["wq"], params["wk"], params["wv"]], axis=1)     # [E, 3E]
        bqkv = jnp.concatenate(
            [params["bq"], params["bk"], params["bv"]])             # [3E]
        qkv = linear(queries.reshape(B * S, E), wqkv, bqkv)
        qkv = qkv.reshape(B, S, 3, H, D)       # free contiguous reshape
        qa = ka = va = qkv
        g_q, g_k, g_v = 0, 1, 2
    else:
        qa = linear(queries.reshape(B * S, E), params["wq"],
                    params["bq"]).reshape(B, S, 1, H, D)
        ka = linear(keys.reshape(B * S, E), params["wk"],
                    params["bk"]).reshape(B, S, 1, H, D)
        va = linear(values.reshape(B * S, E), params["wv"],
                    params["bv"]).reshape(B, S, 1, H, D)
        g_q = g_k = g_v = 0

    mask = None
    if attention_mask is not None:
        mask = attention_mask.astype(jnp.int8)   # 4x less HBM traffic vs int32

    ctx = flash_attention(qa, ka, va, mask,
                          q_idx=g_q, k_idx=g_k, v_idx=g_v)   # [B, S, H, D]
    out = linear(ctx.reshape(B * S, E), params["wo"], params["bo"])
    return out.reshape(B, S, E)


# ---------------------------------------------------------------------------
# Deterministic parameter init (nn.Linear-style uniform)
# ---------------------------------------------------------------------------
def init_params(key, embedding_dim):
    bound = 1.0 / math.sqrt(embedding_dim)
    names = ["q", "k", "v", "o"]
    keys = jax.random.split(key, 2 * len(names))
    params = {}
    for i, n in enumerate(names):
        params[f"w{n}"] = jax.random.uniform(
            keys[2 * i], (embedding_dim, embedding_dim), jnp.float32,
            minval=-bound, maxval=bound)
        params[f"b{n}"] = jax.random.uniform(
            keys[2 * i + 1], (embedding_dim,), jnp.float32,
            minval=-bound, maxval=bound)
    return params


# ---------------------------------------------------------------------------
# Pure-JAX reference (mirrors the PyTorch module) for validation
# ---------------------------------------------------------------------------
def _reference_mha(queries, keys, values, params, attention_mask, num_heads):
    B, S, E = queries.shape
    D = E // num_heads

    def proj(x, w, b):
        return x @ w + b

    def split(x):
        return x.reshape(B, S, num_heads, D).transpose(0, 2, 1, 3)

    q = split(proj(queries, params["wq"], params["bq"]))
    k = split(proj(keys, params["wk"], params["bk"]))
    v = split(proj(values, params["wv"], params["bv"]))
    s = jnp.einsum("bhqd,bhkd->bhqk", q / math.sqrt(D), k)
    if attention_mask is not None:
        s = jnp.where(attention_mask[:, None, :, :] == 0,
                      jnp.finfo(s.dtype).min, s)
    p = jax.nn.softmax(s, axis=-1)
    ctx = jnp.einsum("bhqk,bhkd->bhqd", p, v)
    ctx = ctx.transpose(0, 2, 1, 3).reshape(B, S, E)
    return ctx @ params["wo"] + params["bo"]


if __name__ == "__main__":
    B, S, E, H = 2, 8, 32, 4

    root = jax.random.PRNGKey(0)
    kp, kq, kk, kv = jax.random.split(root, 4)

    params = init_params(kp, E)
    queries = jax.random.normal(kq, (B, S, E), jnp.float32)
    keys = jax.random.normal(kk, (B, S, E), jnp.float32)
    values = jax.random.normal(kv, (B, S, E), jnp.float32)

    # causal mask to exercise the masking path (0 = masked out)
    causal = jnp.tril(jnp.ones((S, S), jnp.int32))
    mask = jnp.broadcast_to(causal, (B, S, S))

    # 1) general (cross-attention) path: separate projections, with mask
    out = multi_head_attention(queries, keys, values, params, mask,
                               num_heads=H)
    jax.block_until_ready(out)
    assert out.shape == (B, S, E)
    ref = _reference_mha(queries, keys, values, params, mask, H)
    assert jnp.allclose(out, ref, atol=2e-3, rtol=2e-3), "masked path mismatch"

    # 2) self-attention path: fused QKV projection, no mask
    out2 = multi_head_attention(queries, queries, queries, params, None,
                                num_heads=H)
    jax.block_until_ready(out2)
    assert out2.shape == (B, S, E)
    ref2 = _reference_mha(queries, queries, queries, params, None, H)
    assert jnp.allclose(out2, ref2, atol=2e-3, rtol=2e-3), "fused path mismatch"

    print("KERNEL_OK")
</pallas_src>

<mosaic_0001>
module attributes {stable_mosaic.version = 11 : i64} {
  func.func @_linear_kernel(%arg0: i32, %arg1: i32, %arg2: i32, %arg3: memref<16x32xf32, #tpu.memory_space<vmem>>, %arg4: memref<32x32xf32, #tpu.memory_space<vmem>>, %arg5: memref<1x32xf32, #tpu.memory_space<vmem>>, %arg6: memref<16x32xf32, #tpu.memory_space<vmem>>, %arg7: memref<16x32xf32, #tpu.memory_space<vmem>>) attributes {dimension_semantics = [#tpu.dimension_semantics<parallel>, #tpu.dimension_semantics<parallel>, #tpu.dimension_semantics<arbitrary>], iteration_bounds = array<i64: 1, 1, 1>, scalar_prefetch = 0 : i64, scratch_operands = 1 : i64, tpu.core_type = #tpu.core_type<tc>, window_params = [{transform_indices = @transform_0, window_bounds = array<i64: 16, 32>}, {transform_indices = @transform_1, window_bounds = array<i64: 32, 32>}, {transform_indices = @transform_2, window_bounds = array<i64: 1, 32>}, {transform_indices = @transform_3, window_bounds = array<i64: 16, 32>}]} {
    %c0_i32 = arith.constant 0 : i32
    %0 = arith.cmpi eq, %arg2, %c0_i32 : i32
    %1 = arith.extui %0 : i1 to i32
    %c0_i32_0 = arith.constant 0 : i32
    %2 = arith.cmpi ne, %1, %c0_i32_0 : i32
    scf.if %2 {
      %cst_10 = arith.constant 0.000000e+00 : f32
      %12 = vector.broadcast %cst_10 : f32 to vector<16x32xf32>
      %c0_11 = arith.constant 0 : index
      %c0_12 = arith.constant 0 : index
      %13 = vector.load %arg7[%c0_11, %c0_12] : memref<16x32xf32, #tpu.memory_space<vmem>>, vector<16x32xf32>
      tpu.vector_store %arg7[%c0_11, %c0_12], %12 {strides = array<i32>} : memref<16x32xf32, #tpu.memory_space<vmem>>, vector<16x32xf32>,
    } else {
    }
    %c0 = arith.constant 0 : index
    %c0_1 = arith.constant 0 : index
    %3 = vector.load %arg7[%c0, %c0_1] : memref<16x32xf32, #tpu.memory_space<vmem>>, vector<16x32xf32>
    %c0_2 = arith.constant 0 : index
    %c0_3 = arith.constant 0 : index
    %4 = vector.load %arg3[%c0_2, %c0_3] : memref<16x32xf32, #tpu.memory_space<vmem>>, vector<16x32xf32>
    %c0_4 = arith.constant 0 : index
    %c0_5 = arith.constant 0 : index
    %5 = vector.load %arg4[%c0_4, %c0_5] : memref<32x32xf32, #tpu.memory_space<vmem>>, vector<32x32xf32>
    %cst = arith.constant dense<0.000000e+00> : vector<16x32xf32>
    %6 = tpu.matmul %4, %5, %cst {dimension_numbers = #tpu.dot_dimension_numbers<[1], [0], [0], [1], [0, 0, 1, 1], [], []>} : vector<16x32xf32>, vector<32x32xf32>, vector<16x32xf32> -> vector<16x32xf32>
    %7 = arith.addf %3, %6 : vector<16x32xf32>
    %c0_6 = arith.constant 0 : index
    %c0_7 = arith.constant 0 : index
    %8 = vector.load %arg7[%c0_6, %c0_7] : memref<16x32xf32, #tpu.memory_space<vmem>>, vector<16x32xf32>
    tpu.vector_store %arg7[%c0_6, %c0_7], %7 {strides = array<i32>} : memref<16x32xf32, #tpu.memory_space<vmem>>, vector<16x32xf32>,
    %c0_i32_8 = arith.constant 0 : i32
    %9 = arith.cmpi eq, %arg2, %c0_i32_8 : i32
    %10 = arith.extui %9 : i1 to i32
    %c0_i32_9 = arith.constant 0 : i32
    %11 = arith.cmpi ne, %10, %c0_i32_9 : i32
    scf.if %11 {
      %c0_10 = arith.constant 0 : index
      %c0_11 = arith.constant 0 : index
      %12 = vector.load %arg7[%c0_10, %c0_11] : memref<16x32xf32, #tpu.memory_space<vmem>>, vector<16x32xf32>
      %c0_12 = arith.constant 0 : index
      %c0_13 = arith.constant 0 : index
      %13 = vector.load %arg5[%c0_12, %c0_13] : memref<1x32xf32, #tpu.memory_space<vmem>>, vector<1x32xf32>
      %14 = vector.broadcast %13 : vector<1x32xf32> to vector<16x32xf32>
      %15 = arith.addf %12, %14 : vector<16x32xf32>
      %c0_14 = arith.constant 0 : index
      %c0_15 = arith.constant 0 : index
      %16 = vector.load %arg6[%c0_14, %c0_15] : memref<16x32xf32, #tpu.memory_space<vmem>>, vector<16x32xf32>
      tpu.vector_store %arg6[%c0_14, %c0_15], %15 {strides = array<i32>} : memref<16x32xf32, #tpu.memory_space<vmem>>, vector<16x32xf32>,
    } else {
    }
    return
  }
  func.func @transform_0(%arg0: i32, %arg1: i32, %arg2: i32) -> (i32, i32) {
    %c0_i32 = arith.constant 0 : i32
    return %arg0, %arg2 : i32, i32
  }
  func.func @transform_1(%arg0: i32, %arg1: i32, %arg2: i32) -> (i32, i32) {
    %c0_i32 = arith.constant 0 : i32
    return %arg2, %arg1 : i32, i32
  }
  func.func @transform_2(%arg0: i32, %arg1: i32, %arg2: i32) -> (i32, i32) {
    %c0_i32 = arith.constant 0 : i32
    %c0_i32_0 = arith.constant 0 : i32
    return %c0_i32, %arg1 : i32, i32
  }
  func.func @transform_3(%arg0: i32, %arg1: i32, %arg2: i32) -> (i32, i32) {
    %c0_i32 = arith.constant 0 : i32
    return %arg0, %arg1 : i32, i32
  }
}

</mosaic_0001>

<bundles_post_ra>
// kernel: tpu_custom_call.1
= control target key start
LH: loop header
LB: loop body
LE: loop exit
PB: predicated region body
PF: predicated region fallthrough
CT: control target
= control target key end

     0   :  { %8 = vsyncpa [#allocation4], 0  ;;  %s366_s0 = inlined_call_operand.hbm [shape: f32[16,32], index: 0, kind: input, shape index: {}]   ;;  %s367_s1 = inlined_call_operand.hbm [shape: f32[32,32], index: 1, kind: input, shape index: {}]   ;;  %s368_s2 = inlined_call_operand.vmem [shape: f32[1,32], index: 2, kind: input, shape index: {}]   ;;  %s369_s3 = inlined_call_operand.hbm [shape: f32[16,32], index: 3, kind: output, shape index: {}]  }
   0x1   :  { %9 = vsyncpa [#allocation7], 0 }
   0x2   :  { %10 = vsyncpa [#allocation5], 0  ;;  %s284_s12 = smov [#allocation3]   ;;  %s212_s16 = scalar_lea.hbm %s366_s0, 256 }
   0x3   :  { %s16_s13 = sshll.u32 %s284_s12, 4  ;;  %p213_p0 = scmp.ne.s32.totalorder %s366_s0, %s212_s16  ;;  %s17_s13 = int_to_ptr.vmem [resolvable:$true] %s16_s13 }
   0x4   :  { %p216_p1 = scmp.lt.u32.totalorder %s212_s16, %s366_s0 }
   0x6   :  { %p218_p2 = pnand %p216_p1, %p213_p0 }
   0x8   :  { %221 = shalt.err (!%p218_p2)
}
   0x9   :  { %s222_s21 = scalar_lea.vmem %s17_s13, 256  ;;  %p227_p4 = scmp.lt.s32.totalorder %s17_s13, %s17_s13 }
   0xa   :  { %p223_p3 = scmp.ne.s32.totalorder %s17_s13, %s222_s21  ;;  %p228_p5 = scmp.lt.s32.totalorder %s222_s21, %s222_s21 }
   0xc   :  { %p229_p6 = por %p228_p5, %p227_p4 }
   0xe   :  { %p230_p7 = pnand %p229_p6, %p223_p3 }
  0x10   :  { %233 = shalt.err (!%p230_p7)
}
  0x11   :  { %s285_s22 = smov 128   ;;  %s286_s23 = smov 8  }
  0x12   :  { %22 = dma.hbm_to_vmem [thread:$0]  %s366_s0, 256, %s17_s13, [#allocation4], %s285_s22, %s285_s22, %s286_s23  }
  0x13   :  { %s287_s26 = smov [#allocation6]   ;;  %s234_s30 = scalar_lea.hbm %s367_s1, 512 }
  0x14   :  { %s28_s27 = sshll.u32 %s287_s26, 4  ;;  %p235_p8 = scmp.ne.s32.totalorder %s367_s1, %s234_s30  ;;  %s29_s27 = int_to_ptr.vmem [resolvable:$true] %s28_s27 }
  0x15   :  { %p238_p9 = scmp.lt.u32.totalorder %s234_s30, %s367_s1 }
  0x17   :  { %p240_p10 = pnand %p238_p9, %p235_p8 }
  0x19   :  { %243 = shalt.err (!%p240_p10)
}
  0x1a   :  { %s244_s8 = scalar_lea.vmem %s29_s27, 512  ;;  %p249_p12 = scmp.lt.s32.totalorder %s29_s27, %s29_s27 }
  0x1b   :  { %p245_p11 = scmp.ne.s32.totalorder %s29_s27, %s244_s8  ;;  %p250_p13 = scmp.lt.s32.totalorder %s244_s8, %s244_s8 }
  0x1d   :  { %p251_p0 = por %p250_p13, %p249_p12 }
  0x1f   :  { %p252_p1 = pnand %p251_p0, %p245_p11 }
  0x21   :  { %255 = shalt.err (!%p252_p1)
}
  0x22   :  { %34 = dma.hbm_to_vmem [thread:$0]  %s367_s1, 512, %s29_s27, [#allocation7], %s285_s22, %s285_s22, %s286_s23  }
  0x23   :  { %278 = dma.done.wait [#allocation4], 256  }
  0x24   :  { %279 = vsyncadd [#allocation4], 4294967040 }
  0x25   :  { %280 = dma.done.wait [#allocation7], 512  }
  0x26   :  { %281 = vsyncadd [#allocation7], 4294966784  ;;  %vm47_vm0 = vcmask 261120   ;;  %v288_v0 = vmov 0.0   ;;  %v54_v1 = vld [vmem:[#allocation6] sm:$0xff]  ;;  %v55_v2 = vld [vmem:[#allocation6 + $0x8] sm:$0xff] }
  0x27   :  { %49 = vst.msk [vmem:[#allocation2 + $0x8] sm:$0xff] %vm47_vm0, %v288_v0  ;;  %48 = vst.msk [vmem:[#allocation2] sm:$0xff] %vm47_vm0, %v288_v0  ;;  %v56_v3 = vld [vmem:[#allocation6 + $0x10] sm:$0xff]  ;;  %v198_v4 = vpack.c.bf16 %v55_v2, %v54_v1  ;;  %v57_v5 = vld [vmem:[#allocation6 + $0x18] sm:$0xff]  ;;  %s289_s11 = smov [#allocation8]  }
  0x28   :  { %v52_v6 = vld [vmem:[#allocation3] sm:$0xff]  ;;  %v202_v7 = vpack.c.bf16 %v57_v5, %v56_v3  ;;  %v53_v8 = vld [vmem:[#allocation3 + $0x8] sm:$0xff]  ;;  %v180_v15 = vld [vmem:[%s368_s2] ss:$0 sm:$0xff]  ;;  %s165_s12 = sshll.u32 %s289_s11, 4  ;;  %s166_s12 = int_to_ptr.vmem [resolvable:$true] %s165_s12 }
  0x29   :  { %195 = vmatprep.mubr.msk.f32.mxu0 %vm47_vm0, %v52_v6  ;;  %199 = vmatprep.subr.bf16.mxu0 %v198_v4  ;;  %s256_s13 = scalar_lea.vmem %s166_s12, 256  ;;  %p261_p3 = scmp.lt.s32.totalorder %s166_s12, %s166_s12 }
  0x2a   :  { %201 = vmatpush3.bf16.msra.mxu0 %v198_v4  ;;  %p257_p2 = scmp.ne.s32.totalorder %s166_s12, %s256_s13  ;;  %p262_p4 = scmp.lt.s32.totalorder %s256_s13, %s256_s13 }
  0x2b   :  { %203 = vmatprep.subr.bf16.mxu0 %v202_v7 }
  0x2c   :  { %p263_p5 = por %p262_p4, %p261_p3 }
  0x2e   :  { %205 = vmatpush3.bf16.msra.mxu0 %v202_v7  ;;  %v51_v9 = vld [vmem:[#allocation2 + $0x8] sm:$0xff]  ;;  %v50_v10 = vld [vmem:[#allocation2] sm:$0xff]  ;;  %p264_p6 = pnand %p263_p5, %p257_p2 }
  0x31   :  { %196 = vmatmul.mubr.msk.f32.vlgmr.msra.gmra.mrb[0].mxu0 %vm47_vm0, %v53_v8 }
 0x104   :  { %v197_v11 = vpop.f32.mrb[0].mxu0 }
 0x105   :  { %v141_v12 = vadd.f32 %v197_v11, %v51_v9  ;;  %v131_v13 = vpop.f32.mrb[1].mxu0 }
 0x106   :  { %v140_v14 = vadd.f32 %v131_v13, %v50_v10 }
 0x107   :  { %143 = vst.msk [vmem:[#allocation2 + $0x8] sm:$0xff] %vm47_vm0, %v141_v12 }
 0x108   :  { %142 = vst.msk [vmem:[#allocation2] sm:$0xff] %vm47_vm0, %v140_v14 }
 0x10e   :  { %v148_v16 = vld [vmem:[#allocation2 + $0x8] sm:$0xff] }
 0x10f   :  { %v147_v17 = vld [vmem:[#allocation2] sm:$0xff]  ;;  %v157_v18 = vadd.f32 %v180_v15, %v148_v16 }
 0x110   :  { %v156_v19 = vadd.f32 %v180_v15, %v147_v17 }
 0x111   :  { %159 = vst.msk [vmem:[#allocation8 + $0x8] sm:$0xff] %vm47_vm0, %v157_v18 }
 0x112   :  { %158 = vst.msk [vmem:[#allocation8] sm:$0xff] %vm47_vm0, %v156_v19 }
 0x113   :  { %267 = shalt.err (!%p264_p6)
}
 0x114   :  { %s268_s15 = scalar_lea.hbm %s369_s3, 256 }
 0x115   :  { %p269_p7 = scmp.ne.s32.totalorder %s369_s3, %s268_s15  ;;  %p272_p8 = scmp.lt.u32.totalorder %s268_s15, %s369_s3 }
 0x117   :  { %p274_p9 = pnand %p272_p8, %p269_p7 }
 0x119   :  { %277 = shalt.err (!%p274_p9)
}
 0x11a   :  { %171 = dma.vmem_to_hbm [thread:$0]  %s166_s12, 256, %s369_s3, [#allocation5], %s285_s22, %s285_s22, %s286_s23  }
 0x11b   :  { %282 = dma.done.wait [#allocation5], 256  }
 0x11c   :  { %283 = vsyncadd [#allocation5], 4294967040 }
 0x11d   :  { %175 = vsyncpa [#allocation4], 1 }
 0x11e   :  { %176 = vsyncpa [#allocation7], 1 }
 0x11f   :  { %177 = vsyncpa [#allocation5], 1 }

</bundles_post_ra>
